<compile_context>
chip_gen: v7x
topology: tpu7x:2x2x1
jax: 0.10.0
libtpu: 0.0.40
codegen_flags: <defaults>
</compile_context>

<pallas_src>
import functools

import jax
import jax.numpy as jnp
from jax.experimental import pallas as pl
from jax.experimental.pallas import tpu as pltpu


# ---------------------------------------------------------------------------
# Fused kernel: per batch element, QKV proj -> all-head attention -> out proj.
# ---------------------------------------------------------------------------
def _fused_attention_kernel(x_ref, wq_ref, wk_ref, wv_ref, bias_ref, mask_ref,
                            wp_ref, bp_ref, o_ref, *, num_heads):
    # x_ref:    (1, N, C)    current batch's tokens
    # wq/wk/wv: (C, C)       projection weights, pre-transposed (scale in wq)
    # bias_ref: (H*N, N)     positional bias, row (h*N + n) = pos_bias[h, n, :]
    # mask_ref: (H*N, C)     head_mask[h*N+n, c] = 1 iff channel c belongs to h
    # wp_ref:   (C, C)       output projection, pre-transposed
    # bp_ref:   (1, C)       output projection bias
    # o_ref:    (1, N, C)    output block
    x = x_ref[0]                                                   # (N, C) f32
    N, C = x.shape
    H = num_heads

    # Wide projections: one MXU pass each (scale already folded into wq).
    q = jnp.dot(x, wq_ref[...], preferred_element_type=jnp.float32)
    k = jnp.dot(x, wk_ref[...], preferred_element_type=jnp.float32)
    v = jnp.dot(x, wv_ref[...], preferred_element_type=jnp.float32)

    mask = mask_ref[...]                                           # (H*N, C)

    # Block-diagonal embedding of per-head Q: row h*N+n carries q[n] restricted
    # to head h's channels, so a SINGLE matmul yields every head's scores.
    q_stk = jnp.tile(q, (H, 1)) * mask                             # (H*N, C)

    # scores[h*N+n, m] = <Q_h[n], K_h[m]>   (contract last dims == q_stk @ k^T)
    s = jax.lax.dot_general(q_stk, k, (((1,), (1,)), ((), ())),
                            preferred_element_type=jnp.float32)    # (H*N, N)
    s = s + bias_ref[...]

    # Exact row softmax: each row is one (head, query) pair.
    s = s - jnp.max(s, axis=-1, keepdims=True)
    p = jnp.exp(s)
    p = p / jnp.sum(p, axis=-1, keepdims=True)

    # One matmul for every head's context, then fold heads back into channels:
    # ctx[n, c] = full[h(c)*N + n, c]  ==  torch (attn@v).transpose(1,2).reshape
    full = jnp.dot(p, v, preferred_element_type=jnp.float32)       # (H*N, C)
    fm = full * mask
    ctx = fm[0:N, :]
    for h in range(1, H):                                          # 7 vadds
        ctx = ctx + fm[h * N:(h + 1) * N, :]                       # (N, C)

    # Output projection + bias, lane-dense store.
    y = jnp.dot(ctx, wp_ref[...], preferred_element_type=jnp.float32)
    y = y + bp_ref[...]
    o_ref[0] = y.astype(o_ref.dtype)


# ---------------------------------------------------------------------------
# One-time parameter preprocessing (hoisted out of the forward path).
# ---------------------------------------------------------------------------
def prepare_attention_params(params):
    """Split/transpose PyTorch-layout weights + build head mask, once."""
    qkv_w = jnp.asarray(params["qkv_w"], jnp.float32)     # (3C, C) rows [q;k;v]
    pos_bias = jnp.asarray(params["pos_bias"], jnp.float32)   # (H, N, N)
    c = qkv_w.shape[1]
    h, n, _ = pos_bias.shape
    hd = c // h
    scale = hd ** (-0.5)

    head_of_row = jnp.repeat(jnp.arange(h), n)             # (H*N,)
    head_of_col = jnp.arange(c) // hd                      # (C,)
    head_mask = (head_of_row[:, None] == head_of_col[None, :]).astype(jnp.float32)

    return {
        "wq_t": qkv_w[0 * c:1 * c].T * scale,  # scale folded (exact: 0.5)
        "wk_t": qkv_w[1 * c:2 * c].T,
        "wv_t": qkv_w[2 * c:3 * c].T,
        "bias_stk": pos_bias.reshape(h * n, n),            # (H*N, N)
        "head_mask": head_mask,                            # (H*N, C)
        "wp_t": jnp.asarray(params["proj_w"], jnp.float32).T,
        "bp": jnp.asarray(params["proj_b"], jnp.float32).reshape(1, c),
    }


# ---------------------------------------------------------------------------
# Forward wrapper: a single pallas_call over the batch.
# ---------------------------------------------------------------------------
@jax.jit
def attention_forward(x, prep):
    B, N, C = x.shape
    HN, N2 = prep["bias_stk"].shape
    H = HN // N2

    kernel = functools.partial(_fused_attention_kernel, num_heads=H)
    return pl.pallas_call(
        kernel,
        out_shape=jax.ShapeDtypeStruct((B, N, C), x.dtype),
        grid_spec=pltpu.PrefetchScalarGridSpec(
            num_scalar_prefetch=0,
            grid=(B,),
            in_specs=[
                pl.BlockSpec((1, N, C), lambda b: (b, 0, 0)),    # x
                pl.BlockSpec((C, C), lambda b: (0, 0)),          # wq_t (scaled)
                pl.BlockSpec((C, C), lambda b: (0, 0)),          # wk_t
                pl.BlockSpec((C, C), lambda b: (0, 0)),          # wv_t
                pl.BlockSpec((HN, N), lambda b: (0, 0)),         # bias_stk
                pl.BlockSpec((HN, C), lambda b: (0, 0)),         # head_mask
                pl.BlockSpec((C, C), lambda b: (0, 0)),          # wp_t
                pl.BlockSpec((1, C), lambda b: (0, 0)),          # bp
            ],
            out_specs=pl.BlockSpec((1, N, C), lambda b: (b, 0, 0)),
        ),
        compiler_params=pltpu.CompilerParams(
            # Batch axis parallel: both v7x TensorCores get work; no-op on
            # v5e/v6e (single TC).
            dimension_semantics=("parallel",)),
    )(x, prep["wq_t"], prep["wk_t"], prep["wv_t"], prep["bias_stk"],
      prep["head_mask"], prep["wp_t"], prep["bp"])


# ---------------------------------------------------------------------------
# Pure-JAX reference for verification (mirrors the PyTorch module).
# ---------------------------------------------------------------------------
def attention_ref(x, params, num_heads):
    B, N, C = x.shape
    H = num_heads
    hd = C // H
    scale = hd ** (-0.5)
    qkv = x @ params["qkv_w"].T                                  # (B, N, 3C)
    qkv = qkv.reshape(B, N, 3, H, hd).transpose(2, 0, 3, 1, 4)   # (3, B, H, N, hd)
    q, k, v = qkv[0], qkv[1], qkv[2]
    attn = (q @ jnp.swapaxes(k, -2, -1)) * scale + params["pos_bias"][None]
    attn = jax.nn.softmax(attn, axis=-1)
    out = (attn @ v).transpose(0, 2, 1, 3).reshape(B, N, C)
    return out @ params["proj_w"].T + params["proj_b"]


if __name__ == "__main__":
    # Small shapes consistent with the module: dim=32, token_num=8, num_heads=8
    B, N, C, H = 2, 8, 32, 8

    key = jax.random.PRNGKey(0)
    kx, kpos, kqkv, kpw, kpb = jax.random.split(key, 5)

    x = jax.random.normal(kx, (B, N, C), dtype=jnp.float32)
    params = {
        "pos_bias": jax.random.normal(kpos, (H, N, N), dtype=jnp.float32),
        "qkv_w": jax.random.normal(kqkv, (3 * C, C), dtype=jnp.float32) * 0.1,
        "proj_w": jax.random.normal(kpw, (C, C), dtype=jnp.float32) * 0.1,
        "proj_b": jax.random.normal(kpb, (C,), dtype=jnp.float32) * 0.1,
    }

    # Weight preprocessing runs once (load time), not per forward call.
    prep = prepare_attention_params(params)

    y = attention_forward(x, prep)
    y = jax.block_until_ready(y)

    y_ref = attention_ref(x, params, num_heads=H)
    assert y.shape == (B, N, C)
    assert jnp.allclose(y, y_ref, atol=1e-4, rtol=1e-4), (
        f"max abs err {jnp.max(jnp.abs(y - y_ref))}")

    print("KERNEL_OK")
</pallas_src>

<mosaic_0001>
module attributes {stable_mosaic.version = 11 : i64} {
  func.func @_fused_attention_kernel(%arg0: i32, %arg1: memref<1x8x32xf32, #tpu.memory_space<vmem>>, %arg2: memref<32x32xf32, #tpu.memory_space<vmem>>, %arg3: memref<32x32xf32, #tpu.memory_space<vmem>>, %arg4: memref<32x32xf32, #tpu.memory_space<vmem>>, %arg5: memref<64x8xf32, #tpu.memory_space<vmem>>, %arg6: memref<64x32xf32, #tpu.memory_space<vmem>>, %arg7: memref<32x32xf32, #tpu.memory_space<vmem>>, %arg8: memref<1x32xf32, #tpu.memory_space<vmem>>, %arg9: memref<1x8x32xf32, #tpu.memory_space<vmem>>) attributes {dimension_semantics = [#tpu.dimension_semantics<parallel>], iteration_bounds = array<i64: 2>, scalar_prefetch = 0 : i64, scratch_operands = 0 : i64, tpu.core_type = #tpu.core_type<tc>, window_params = [{transform_indices = @transform_0, window_bounds = array<i64: 1, 8, 32>}, {pipeline_mode = #tpu.pipeline_mode<synchronous>, transform_indices = @transform_1, window_bounds = array<i64: 32, 32>}, {pipeline_mode = #tpu.pipeline_mode<synchronous>, transform_indices = @transform_2, window_bounds = array<i64: 32, 32>}, {pipeline_mode = #tpu.pipeline_mode<synchronous>, transform_indices = @transform_3, window_bounds = array<i64: 32, 32>}, {pipeline_mode = #tpu.pipeline_mode<synchronous>, transform_indices = @transform_4, window_bounds = array<i64: 64, 8>}, {pipeline_mode = #tpu.pipeline_mode<synchronous>, transform_indices = @transform_5, window_bounds = array<i64: 64, 32>}, {pipeline_mode = #tpu.pipeline_mode<synchronous>, transform_indices = @transform_6, window_bounds = array<i64: 32, 32>}, {pipeline_mode = #tpu.pipeline_mode<synchronous>, transform_indices = @transform_7, window_bounds = array<i64: 1, 32>}, {transform_indices = @transform_8, window_bounds = array<i64: 1, 8, 32>}]} {
    %c0 = arith.constant 0 : index
    %c0_0 = arith.constant 0 : index
    %c0_1 = arith.constant 0 : index
    %0 = vector.load %arg1[%c0, %c0_0, %c0_1] : memref<1x8x32xf32, #tpu.memory_space<vmem>>, vector<1x8x32xf32>
    %1 = vector.shape_cast %0 : vector<1x8x32xf32> to vector<8x32xf32>
    %c0_2 = arith.constant 0 : index
    %c0_3 = arith.constant 0 : index
    %2 = vector.load %arg2[%c0_2, %c0_3] : memref<32x32xf32, #tpu.memory_space<vmem>>, vector<32x32xf32>
    %cst = arith.constant dense<0.000000e+00> : vector<8x32xf32>
    %3 = tpu.matmul %1, %2, %cst {dimension_numbers = #tpu.dot_dimension_numbers<[1], [0], [0], [1], [0, 0, 1, 1], [], []>} : vector<8x32xf32>, vector<32x32xf32>, vector<8x32xf32> -> vector<8x32xf32>
    %c0_4 = arith.constant 0 : index
    %c0_5 = arith.constant 0 : index
    %4 = vector.load %arg3[%c0_4, %c0_5] : memref<32x32xf32, #tpu.memory_space<vmem>>, vector<32x32xf32>
    %cst_6 = arith.constant dense<0.000000e+00> : vector<8x32xf32>
    %5 = tpu.matmul %1, %4, %cst_6 {dimension_numbers = #tpu.dot_dimension_numbers<[1], [0], [0], [1], [0, 0, 1, 1], [], []>} : vector<8x32xf32>, vector<32x32xf32>, vector<8x32xf32> -> vector<8x32xf32>
    %c0_7 = arith.constant 0 : index
    %c0_8 = arith.constant 0 : index
    %6 = vector.load %arg4[%c0_7, %c0_8] : memref<32x32xf32, #tpu.memory_space<vmem>>, vector<32x32xf32>
    %cst_9 = arith.constant dense<0.000000e+00> : vector<8x32xf32>
    %7 = tpu.matmul %1, %6, %cst_9 {dimension_numbers = #tpu.dot_dimension_numbers<[1], [0], [0], [1], [0, 0, 1, 1], [], []>} : vector<8x32xf32>, vector<32x32xf32>, vector<8x32xf32> -> vector<8x32xf32>
    %c0_10 = arith.constant 0 : index
    %c0_11 = arith.constant 0 : index
    %8 = vector.load %arg6[%c0_10, %c0_11] : memref<64x32xf32, #tpu.memory_space<vmem>>, vector<64x32xf32>
    %9 = tpu.concatenate %3, %3, %3, %3, %3, %3, %3, %3 in 0 : vector<8x32xf32>, vector<8x32xf32>, vector<8x32xf32>, vector<8x32xf32>, vector<8x32xf32>, vector<8x32xf32>, vector<8x32xf32>, vector<8x32xf32> -> vector<64x32xf32>
    %10 = arith.mulf %9, %8 : vector<64x32xf32>
    %cst_12 = arith.constant dense<0.000000e+00> : vector<64x8xf32>
    %11 = tpu.matmul %10, %5, %cst_12 {dimension_numbers = #tpu.dot_dimension_numbers<[1], [1], [0], [0], [0, 0, 1, 0], [], []>} : vector<64x32xf32>, vector<8x32xf32>, vector<64x8xf32> -> vector<64x8xf32>
    %c0_13 = arith.constant 0 : index
    %c0_14 = arith.constant 0 : index
    %12 = vector.load %arg5[%c0_13, %c0_14] : memref<64x8xf32, #tpu.memory_space<vmem>>, vector<64x8xf32>
    %13 = arith.addf %11, %12 : vector<64x8xf32>
    %cst_15 = arith.constant dense<0xFF800000> : vector<64xf32>
    %14 = vector.multi_reduction <maximumf>, %13, %cst_15 [1] : vector<64x8xf32> to vector<64xf32>
    %15 = vector.shape_cast %14 : vector<64xf32> to vector<64x1xf32>
    %16 = vector.broadcast %15 : vector<64x1xf32> to vector<64x8xf32>
    %17 = arith.subf %13, %16 : vector<64x8xf32>
    %18 = math.exp %17 : vector<64x8xf32>
    %cst_16 = arith.constant dense<0.000000e+00> : vector<64xf32>
    %19 = vector.multi_reduction <add>, %18, %cst_16 [1] : vector<64x8xf32> to vector<64xf32>
    %20 = vector.shape_cast %19 : vector<64xf32> to vector<64x1xf32>
    %21 = vector.broadcast %20 : vector<64x1xf32> to vector<64x8xf32>
    %22 = arith.divf %18, %21 : vector<64x8xf32>
    %cst_17 = arith.constant dense<0.000000e+00> : vector<64x32xf32>
    %23 = tpu.matmul %22, %7, %cst_17 {dimension_numbers = #tpu.dot_dimension_numbers<[1], [0], [0], [1], [0, 0, 1, 1], [], []>} : vector<64x8xf32>, vector<8x32xf32>, vector<64x32xf32> -> vector<64x32xf32>
    %24 = arith.mulf %23, %8 : vector<64x32xf32>
    %25 = vector.extract_strided_slice %24 {offsets = [0, 0], sizes = [8, 32], strides = [1, 1]} : vector<64x32xf32> to vector<8x32xf32>
    %26 = vector.extract_strided_slice %24 {offsets = [8, 0], sizes = [8, 32], strides = [1, 1]} : vector<64x32xf32> to vector<8x32xf32>
    %27 = arith.addf %25, %26 : vector<8x32xf32>
    %28 = vector.extract_strided_slice %24 {offsets = [16, 0], sizes = [8, 32], strides = [1, 1]} : vector<64x32xf32> to vector<8x32xf32>
    %29 = arith.addf %27, %28 : vector<8x32xf32>
    %30 = vector.extract_strided_slice %24 {offsets = [24, 0], sizes = [8, 32], strides = [1, 1]} : vector<64x32xf32> to vector<8x32xf32>
    %31 = arith.addf %29, %30 : vector<8x32xf32>
    %32 = vector.extract_strided_slice %24 {offsets = [32, 0], sizes = [8, 32], strides = [1, 1]} : vector<64x32xf32> to vector<8x32xf32>
    %33 = arith.addf %31, %32 : vector<8x32xf32>
    %34 = vector.extract_strided_slice %24 {offsets = [40, 0], sizes = [8, 32], strides = [1, 1]} : vector<64x32xf32> to vector<8x32xf32>
    %35 = arith.addf %33, %34 : vector<8x32xf32>
    %36 = vector.extract_strided_slice %24 {offsets = [48, 0], sizes = [8, 32], strides = [1, 1]} : vector<64x32xf32> to vector<8x32xf32>
    %37 = arith.addf %35, %36 : vector<8x32xf32>
    %38 = vector.extract_strided_slice %24 {offsets = [56, 0], sizes = [8, 32], strides = [1, 1]} : vector<64x32xf32> to vector<8x32xf32>
    %39 = arith.addf %37, %38 : vector<8x32xf32>
    %c0_18 = arith.constant 0 : index
    %c0_19 = arith.constant 0 : index
    %40 = vector.load %arg7[%c0_18, %c0_19] : memref<32x32xf32, #tpu.memory_space<vmem>>, vector<32x32xf32>
    %cst_20 = arith.constant dense<0.000000e+00> : vector<8x32xf32>
    %41 = tpu.matmul %39, %40, %cst_20 {dimension_numbers = #tpu.dot_dimension_numbers<[1], [0], [0], [1], [0, 0, 1, 1], [], []>} : vector<8x32xf32>, vector<32x32xf32>, vector<8x32xf32> -> vector<8x32xf32>
    %c0_21 = arith.constant 0 : index
    %c0_22 = arith.constant 0 : index
    %42 = vector.load %arg8[%c0_21, %c0_22] : memref<1x32xf32, #tpu.memory_space<vmem>>, vector<1x32xf32>
    %43 = vector.broadcast %42 : vector<1x32xf32> to vector<8x32xf32>
    %44 = arith.addf %41, %43 : vector<8x32xf32>
    %c0_23 = arith.constant 0 : index
    %c0_24 = arith.constant 0 : index
    %c0_25 = arith.constant 0 : index
    %45 = vector.load %arg9[%c0_23, %c0_24, %c0_25] : memref<1x8x32xf32, #tpu.memory_space<vmem>>, vector<1x8x32xf32>
    %46 = vector.shape_cast %45 : vector<1x8x32xf32> to vector<8x32xf32>
    %47 = vector.shape_cast %44 : vector<8x32xf32> to vector<1x8x32xf32>
    tpu.vector_store %arg9[%c0_23, %c0_24, %c0_25], %47 {strides = array<i32>} : memref<1x8x32xf32, #tpu.memory_space<vmem>>, vector<1x8x32xf32>,
    return
  }
  func.func @transform_0(%arg0: i32) -> (i32, i32, i32) {
    %c0_i32 = arith.constant 0 : i32
    %c0_i32_0 = arith.constant 0 : i32
    %c0_i32_1 = arith.constant 0 : i32
    return %arg0, %c0_i32, %c0_i32_0 : i32, i32, i32
  }
  func.func @transform_1(%arg0: i32) -> (i32, i32) {
    %c0_i32 = arith.constant 0 : i32
    %c0_i32_0 = arith.constant 0 : i32
    %c0_i32_1 = arith.constant 0 : i32
    return %c0_i32, %c0_i32_0 : i32, i32
  }
  func.func @transform_2(%arg0: i32) -> (i32, i32) {
    %c0_i32 = arith.constant 0 : i32
    %c0_i32_0 = arith.constant 0 : i32
    %c0_i32_1 = arith.constant 0 : i32
    return %c0_i32, %c0_i32_0 : i32, i32
  }
  func.func @transform_3(%arg0: i32) -> (i32, i32) {
    %c0_i32 = arith.constant 0 : i32
    %c0_i32_0 = arith.constant 0 : i32
    %c0_i32_1 = arith.constant 0 : i32
    return %c0_i32, %c0_i32_0 : i32, i32
  }
  func.func @transform_4(%arg0: i32) -> (i32, i32) {
    %c0_i32 = arith.constant 0 : i32
    %c0_i32_0 = arith.constant 0 : i32
    %c0_i32_1 = arith.constant 0 : i32
    return %c0_i32, %c0_i32_0 : i32, i32
  }
  func.func @transform_5(%arg0: i32) -> (i32, i32) {
    %c0_i32 = arith.constant 0 : i32
    %c0_i32_0 = arith.constant 0 : i32
    %c0_i32_1 = arith.constant 0 : i32
    return %c0_i32, %c0_i32_0 : i32, i32
  }
  func.func @transform_6(%arg0: i32) -> (i32, i32) {
    %c0_i32 = arith.constant 0 : i32
    %c0_i32_0 = arith.constant 0 : i32
    %c0_i32_1 = arith.constant 0 : i32
    return %c0_i32, %c0_i32_0 : i32, i32
  }
  func.func @transform_7(%arg0: i32) -> (i32, i32) {
    %c0_i32 = arith.constant 0 : i32
    %c0_i32_0 = arith.constant 0 : i32
    %c0_i32_1 = arith.constant 0 : i32
    return %c0_i32, %c0_i32_0 : i32, i32
  }
  func.func @transform_8(%arg0: i32) -> (i32, i32, i32) {
    %c0_i32 = arith.constant 0 : i32
    %c0_i32_0 = arith.constant 0 : i32
    %c0_i32_1 = arith.constant 0 : i32
    return %arg0, %c0_i32, %c0_i32_0 : i32, i32, i32
  }
}

</mosaic_0001>

<bundles_post_ra>
// kernel: attention_forward.1
= control target key start
LH: loop header
LB: loop body
LE: loop exit
PB: predicated region body
PF: predicated region fallthrough
CT: control target
= control target key end

     0   :  { %13 = vsyncpa [#allocation3], 0  ;;  %s1850_s0 = inlined_call_operand.hbm [shape: f32[2,8,32], index: 0, kind: input, shape index: {}]   ;;  %s1851_s1 = inlined_call_operand.vmem [shape: f32[32,32], index: 1, kind: input, shape index: {}]   ;;  %s1852_s2 = inlined_call_operand.vmem [shape: f32[32,32], index: 2, kind: input, shape index: {}]   ;;  %s1853_s3 = inlined_call_operand.vmem [shape: f32[32,32], index: 3, kind: input, shape index: {}]   ;;  %s1854_s4 = inlined_call_operand.vmem [shape: f32[64,8], index: 4, kind: input, shape index: {}]   ;;  %s1855_s5 = inlined_call_operand.vmem [shape: f32[64,32], index: 5, kind: input, shape index: {}]   ;;  %s1856_s6 = inlined_call_operand.vmem [shape: f32[32,32], index: 6, kind: input, shape index: {}]   ;;  %s1857_s7 = inlined_call_operand.vmem [shape: f32[1,32], index: 7, kind: input, shape index: {}]   ;;  %s1858_s8 = inlined_call_operand.hbm [shape: f32[2,8,32], index: 8, kind: output, shape index: {}]  }
   0x1   :  { %15 = vsyncpa [#allocation3 + $0x1], 0 }
   0x2   :  { %16 = vsyncpa [#allocation4], 0 }
   0x3   :  { %18 = vsyncpa [#allocation4 + $0x1], 0  ;;  %s1503_s27 = smov 0   ;;  %s1505_s28 = smov 0  }
   0x4   :  { %s1507_s29 = smov 0   ;;  %s1509_s30 = smov 0  }
   0x5 LB: > { %s1524_s9 = sadd.s32 4294967295, %s1451_s30   ;;  %s1106_s10 = sadd.s32 4294967294, %s1451_s30   ;;  %s1451_s30 = sphi %s1509_s30, %s1875_s30   ;;  %s1447_s29 = sphi %s1507_s29, %s1874_s29   ;;  %s1443_s28 = sphi %s1505_s28, %s1873_s28   ;;  %s1439_s27 = sphi %s1503_s27, %s1872_s27  }
   0x6   : > { %s1528_s11 = sadd.s32 1, %s1451_s30   ;;  %s31_s12 = sadd.s32 1, %s1447_s29 }
   0x7   : > { %s28_s13 = ssub.s32 %s1451_s30, %s1528_s11  ;;  %p38_p0 = scmp.ne.s32.totalorder %s1447_s29, %s1443_s28 }
   0x8   : > { %p29_p1 = scmp.eq.s32.totalorder %s28_s13, 0  ;;  %p39_p2 = scmp.eq.s32.totalorder %s1451_s30, 0 }
   0x9   : > { %p44_p3 = scmp.ne.s32.totalorder %s1443_s28, %s1439_s27  ;;  %p45_p4 = scmp.eq.s32.totalorder %s1524_s9, 0 }
   0xa   : > { %s1540_s14 = scalar_select %p29_p1, %s1447_s29, %s31_s12  }
   0xb   : > { %p1542_p5 = por %p39_p2, %p38_p0  ;;  %p1546_p6 = por %p45_p4, %p44_p3 }
   0xc   : > { %p215_p7 = scmp.eq.s32.totalorder %s1524_s9, 1  ;;  %p221_p8 = scmp.eq.s32.totalorder %s1106_s10, 1 }
   0xd   : > { %p1286_p10 = scmp.lt.s32.totalorder %s1451_s30, 2  ;;  %s262_s19 = sand.u32 1, %s1447_s29  }
   0xe   : > { %p1553_p11 = por %p215_p7, %p38_p0  ;;  %p1557_p12 = por %p221_p8, %p44_p3 }
   0xf   : > { %s1110_s20 = sshll.u32 %s1451_s30, 7  ;;  %s1109_s21 = sshll.u32 %s262_s19, 3 }
  0x10   : > { %s1863_s17 = scalar_select %p1553_p11, 1, 0 }
  0x11   : > { %s1864_s18 = scalar_select %p1557_p12, 1, 0 }
  0x12   : > { %s1566_s24 = scalar_lea.hbm %s1850_s0, %s1110_s20  ;;  %s266_s25 = scalar_lea.vmem [#allocation2], %s1109_s21 }
  0x13   : > { %s273_s26 = sshll.u32 %s266_s25, 4  ;;  %p1570_p13 = pnand %p1286_p10, %p1542_p5  ;;  %s1574_s26 = int_to_ptr.vmem [resolvable:$true] %s273_s26 }
  0x14   : > { %s263_s12 = scalar_lea.sflag [#allocation3], %s262_s19  ;;  %s1355_s13 = scalar_lea.hbm %s1566_s24, 128 }
  0x15   : > { %p1356_p2 = scmp.ne.s32.totalorder %s1566_s24, %s1355_s13  ;;  %p1357_p3 = pneg %p1570_p13 }
  0x16   : > { %s1360_s21 = scalar_lea.hbm %s1850_s0, 256  ;;  %p1361_p5 = scmp.lt.u32.totalorder %s1566_s24, %s1850_s0 }
  0x17   : > { %p1358_p4 = pnand %p1357_p3, %p1356_p2  ;;  %p1362_p8 = scmp.lt.u32.totalorder %s1360_s21, %s1355_s13 }
  0x18   : > { %p1364_p9 = scmp.lt.u32.totalorder %s1355_s13, %s1566_s24 }
  0x19   : > { %p1359_p7 = pneg %p1358_p4  ;;  %p1363_p10 = por %p1362_p8, %p1361_p5 }
  0x1b   : > { %p1365_p0 = por %p1364_p9, %p1363_p10 }
  0x1d   : > { %p1366_p1 = pnand %p1365_p0, %p1359_p7 }
  0x1f   : > { %1369 = shalt.err (!%p1366_p1)
}
  0x20   : > { %s1370_s19 = scalar_lea.vmem %s1574_s26, 128  ;;  %s1453_s25 = smov [#allocation2]  }
  0x21   : > { %p1371_p2 = scmp.ne.s32.totalorder %s1574_s26, %s1370_s19  ;;  %s1375_s15 = sshll.u32 %s1453_s25, 4  ;;  %s1376_s15 = int_to_ptr.vmem [resolvable:$false] %s1375_s15 }
  0x22   : > { %s1377_s20 = scalar_lea.vmem %s1376_s15, 256  ;;  %p1378_p11 = scmp.lt.s32.totalorder %s1574_s26, %s1376_s15 }
  0x23   : > { %p1373_p4 = pnand %p1371_p2, %p1357_p3  ;;  %p1379_p5 = scmp.lt.s32.totalorder %s1377_s20, %s1370_s19 }
  0x25   : > { %p1374_p12 = pneg %p1373_p4  ;;  %p1380_p8 = por %p1379_p5, %p1378_p11 }
  0x27   : > { %p1381_p9 = pnand %p1380_p8, %p1374_p12 }
  0x29   : > { %1384 = shalt.err (!%p1381_p9)
}
  0x2a   : > { %1281 = dma.hbm_to_vmem [thread:$0]  (!%p1570_p13), %s1566_s24, 128, %s1574_s26, %s263_s12  }
  0x2b   : > { %p1866_p0 = scmp.lt.s32.totalorder %s1451_s30, 3  ;;  %p1867_p1 = scmp.ge.s32.totalorder %s1451_s30, 1 }
  0x2d   : > { %p279_p3 = pnand %p1867_p1, %p1866_p0 }
  0x2e   : > { %s1608_s13 = sand.u32 (!%p279_p3), 1, %s1443_s28  }
  0x2f   : > { %282 = sbr.rel (%p279_p3) target bundleno = 1274 (0x4fa), region = 52  ;;  %s1860_s21 = sshll.u32 (!%p279_p3), %s1608_s13, 3 }
  0x30   : > { %s285_s22 = scalar_lea.sflag (!%p279_p3), [#allocation3], %s1608_s13  ;;  %s288_s10 = scalar_lea.vmem (!%p279_p3), [#allocation2], %s1860_s21 }
  0x36   : > { %1430 = dma.done.wait (%p1546_p6), %s285_s22, 128  }
  0x37   : > { %1432 = vsyncadd (%p1546_p6), %s285_s22, 4294967168  ;;  %v1454_v0 = vmov 0.0|0.0   ;;  %vm1455_vm0 = vmmov 0   ;;  %v1456_v1 = vmov 0.0   ;;  %v400_v2 = vld [vmem:[%s1852_s2] sm:$0xff]  ;;  %v401_v3 = vld [vmem:[%s1852_s2 + $0x8] sm:$0xff] }
  0x38   : > { %1256 = vmatprep.subr.bf16.mxu1 %v1454_v0  ;;  %1250 = vmatprep.subr.bf16.mxu0 %v1454_v0  ;;  %v322_v4 = vld [vmem:[%s1851_s1] sm:$0xff]  ;;  %v1257_v5 = vpack.c.bf16 %v401_v3, %v400_v2  ;;  %v323_v6 = vld [vmem:[%s1851_s1 + $0x8] sm:$0xff]  ;;  %v402_v7 = vld [vmem:[%s1852_s2 + $0x10] sm:$0xff]  ;;  %vm326_vm1 = vcmask 261120   ;;  %vm704_vm2 = vcmask 64512   ;;  %s1137_s25 = sshll.u32 %s1524_s9, 7 }
  0x39   : > { %1197 = vmatprep.mubr.msk.f32.mxu1 %vm1455_vm0, %v1456_v1  ;;  %1186 = vmatprep.mubr.msk.f32.mxu0 %vm1455_vm0, %v1456_v1  ;;  %v403_v8 = vld [vmem:[%s1852_s2 + $0x18] sm:$0xff]  ;;  %v1251_v9 = vpack.c.bf16 %v323_v6, %v322_v4  ;;  %v324_v10 = vld [vmem:[%s1851_s1 + $0x10] sm:$0xff]  ;;  %v321_v14 = vld [vmem:[%s288_s10] sm:$0xff]  ;;  %s1868_s15 = sshll.u32 %s1608_s13, 3  ;;  %s1805_s26 = scalar_lea.hbm %s1858_s8, %s1137_s25 }
  0x3a   : > { %v325_v11 = vld [vmem:[%s1851_s1 + $0x18] sm:$0xff]  ;;  %1258 = vmatpush3.bf16.msra.mxu1 %v1257_v5  ;;  %v1260_v12 = vpack.c.bf16 %v403_v8, %v402_v7  ;;  %v1655_v15 = vld [vmem:[%s1855_s5] sm:$0xff]  ;;  %v1660_v16 = vld [vmem:[%s1855_s5 + $0x8] sm:$0xff]  ;;  %s320_s10 = scalar_lea.vmem [#allocation5], %s1868_s15  ;;  %s1023_s12 = scalar_lea.sflag [#allocation4], %s1608_s13 }
  0x3b   : > { %1252 = vmatpush3.bf16.msra.mxu0 %v1251_v9  ;;  %1259 = vmatprep.subr.bf16.mxu1 %v1454_v0  ;;  %v1254_v13 = vpack.c.bf16 %v325_v11, %v324_v10  ;;  %v1666_v20 = vld [vmem:[%s1855_s5 + $0x10] sm:$0xff]  ;;  %v1677_v25 = vld [vmem:[%s1855_s5 + $0x18] sm:$0xff]  ;;  %v1683_v26 = vld [vmem:[%s1855_s5 + $0x20] sm:$0xff]  ;;  %s1036_s20 = sshll.u32 %s320_s10, 4  ;;  %p1869_p11 = scmp.ne.s32.totalorder %s1863_s17, 0  ;;  %s1807_s20 = int_to_ptr.vmem [resolvable:$true] %s1036_s20 }
  0x3c   : > { %1253 = vmatprep.subr.bf16.mxu0 %v1454_v0  ;;  %v1691_v29 = vld [vmem:[%s1855_s5 + $0x28] sm:$0xff]  ;;  %v1697_v30 = vld [vmem:[%s1855_s5 + $0x30] sm:$0xff]  ;;  %v1705_v33 = vld [vmem:[%s1855_s5 + $0x38] sm:$0xff]  ;;  %s1385_s9 = scalar_lea.vmem %s1807_s20, 128  ;;  %s1457_s23 = smov [#allocation5]  }
  0x3d   : > { %v474_v35 = vld [vmem:[%s1853_s3] sm:$0xff]  ;;  %v475_v36 = vld [vmem:[%s1853_s3 + $0x8] sm:$0xff]  ;;  %v476_v37 = vld [vmem:[%s1853_s3 + $0x10] sm:$0xff]  ;;  %p1386_p6 = scmp.ne.s32.totalorder %s1807_s20, %s1385_s9  ;;  %s1389_s16 = sshll.u32 %s1457_s23, 4  ;;  %s1390_s16 = int_to_ptr.vmem [resolvable:$false] %s1389_s16 }
  0x3e   : > { %1261 = vmatpush3.bf16.msra.mxu1 %v1260_v12  ;;  %v1263_v38 = vpack.c.bf16 %v475_v36, %v474_v35  ;;  %v477_v39 = vld [vmem:[%s1853_s3 + $0x18] sm:$0xff]  ;;  %v564_v41 = vld [vmem:[%s1854_s4] sm:$0xff]  ;;  %v565_v43 = vld [vmem:[%s1854_s4 + $0x8] sm:$0xff]  ;;  %s1391_s21 = scalar_lea.vmem %s1390_s16, 256  ;;  %p1392_p7 = scmp.lt.s32.totalorder %s1807_s20, %s1390_s16 }
  0x3f   : > { %1255 = vmatpush3.bf16.msra.mxu0 %v1254_v13  ;;  %v1266_v40 = vpack.c.bf16 %v477_v39, %v476_v37  ;;  %v566_v46 = vld [vmem:[%s1854_s4 + $0x10] sm:$0xff]  ;;  %v567_v50 = vld [vmem:[%s1854_s4 + $0x18] sm:$0xff]  ;;  %v568_v53 = vld [vmem:[%s1854_s4 + $0x20] sm:$0xff]  ;;  %p1387_p12 = pnand %p1386_p6, %p1869_p11  ;;  %p1393_p10 = scmp.lt.s32.totalorder %s1391_s21, %s1385_s9 }
  0x40   : > { %1262 = vmatprep.subr.bf16.mxu0 %v1454_v0  ;;  %v569_v58 = vld [vmem:[%s1854_s4 + $0x28] sm:$0xff]  ;;  %v570_v61 = vld [vmem:[%s1854_s4 + $0x30] sm:$0xff]  ;;  %v571_v3 = vld [vmem:[%s1854_s4 + $0x38] sm:$0xff] }
  0x41   : > { %1198 = vmatmul.mubr.msk.f32.vlgmr.msra.gmra.mrb[0].mxu1 %vm326_vm1, %v321_v14  ;;  %p1388_p13 = pneg %p1387_p12  ;;  %p1394_p2 = por %p1393_p10, %p1392_p7 }
  0x42   : > { %1187 = vmatmul.mubr.msk.f32.vlgmr.msra.gmra.mrb[0].mxu0 %vm326_vm1, %v321_v14 }
  0x43   : > { %1208 = vmatprep.mubr.msk.f32.mxu0 %vm1455_vm0, %v1456_v1  ;;  %1264 = vmatpush3.bf16.msra.mxu0 %v1263_v38  ;;  %p1395_p4 = pnand %p1394_p2, %p1388_p13 }
  0x44   : > { %1265 = vmatprep.subr.bf16.mxu0 %v1454_v0 }
  0x47   : > { %1267 = vmatpush3.bf16.msra.mxu0 %v1266_v40 }
  0x4a   : > { %1209 = vmatmul.mubr.msk.f32.vlgmr.msra.gmra.mrb[2].mxu0 %vm326_vm1, %v321_v14 }
 0x114   : > { %v470_v17 = vpop.f32.mrb[0].mxu1 }
 0x115   : > { %v396_v18 = vpop.f32.mrb[0].mxu0  ;;  %v1199_v19 = vpop.f32.mrb[1].mxu1  ;;  %1211 = vmatprep.subr.msk.mxu1 %vm326_vm1, %v470_v17 }
 0x116   : > { %v1188_v21 = vpop.f32.mrb[1].mxu0  ;;  %1212 = vmatpush3.xpose.msk.msra.mxu1 %vm326_vm1, %v470_v17  ;;  %v556_v22 = vmul.f32 %v1655_v15, %v396_v18  ;;  %v557_v23 = vmul.f32 %v1660_v16, %v396_v18  ;;  %v558_v24 = vmul.f32 %v1666_v20, %v396_v18  ;;  %v559_v27 = vmul.f32 %v1677_v25, %v396_v18 }
 0x117   : > { %1268 = vmatprep.subr.bf16.mxu1 %v1454_v0  ;;  %v560_v28 = vmul.f32 %v1683_v26, %v396_v18  ;;  %v561_v31 = vmul.f32 %v1691_v29, %v396_v18  ;;  %v562_v32 = vmul.f32 %v1697_v30, %v396_v18  ;;  %v563_v34 = vmul.f32 %v1705_v33, %v396_v18 }
 0x118   : > { %1213 = vmatprep.mubr.msk.f32.mxu1 %vm326_vm1, %v556_v22 }
 0x119   : > { %1214 = vmatmul.mubr.msk.f32.vlgmr.msra.gmra.mrb[2].mxu1 %vm326_vm1, %v557_v23 }
 0x11a   : > { %1216 = vmatprep.mubr.msk.f32.mxu1 %vm326_vm1, %v558_v24 }
 0x11d   : > { %1217 = vmatmul.mubr.msk.f32.gmra.mrb[4].mxu1 %vm326_vm1, %v559_v27 }
 0x11e   : > { %1219 = vmatprep.mubr.msk.f32.mxu1 %vm326_vm1, %v560_v28 }
 0x121   : > { %1220 = vmatmul.mubr.msk.f32.gmra.mrb[6].mxu1 %vm326_vm1, %v561_v31 }
 0x122   : > { %1222 = vmatprep.mubr.msk.f32.mxu1 %vm326_vm1, %v562_v32 }
 0x125   : > { %1223 = vmatmul.mubr.msk.f32.gmra.mrb[8].mxu1 %vm326_vm1, %v563_v34 }
 0x126   : > { %1247 = vmatprep.mubr.msk.f32.mxu1 %vm1455_vm0, %v1456_v1 }
 0x1ec   : > { %v1215_v42 = vpop.f32.mrb[2].mxu1 }
 0x1ed   : > { %v665_v44 = vpop.f32.mrb[3].mxu1  ;;  %v671_v47 = vadd.f32 %v1215_v42, %v565_v43 }
 0x1ee   : > { %v666_v45 = vadd.f32 %v665_v44, %v564_v41 }
 0x1ef   : > { %v708_v57 = vsel %vm704_vm2, %v671_v47, -inf }
 0x1f0   : > { %v1218_v48 = vpop.f32.mrb[4].mxu1  ;;  %v705_v49 = vsel %vm704_vm2, %v666_v45, -inf }
 0x1f1   : > { %v675_v51 = vpop.f32.mrb[5].mxu1  ;;  %706 = vmax.xlane.f32.xlu0 %v705_v49  ;;  %v681_v54 = vadd.f32 %v1218_v48, %v567_v50 }
 0x1f2   : > { %v676_v52 = vadd.f32 %v675_v51, %v566_v46 }
 0x1f3   : > { %v714_v1 = vsel %vm704_vm2, %v681_v54, -inf }
 0x1f4   : > { %v1221_v55 = vpop.f32.mrb[6].mxu1  ;;  %v711_v56 = vsel %vm704_vm2, %v676_v52, -inf }
 0x1f5   : > { %v685_v59 = vpop.f32.mrb[7].mxu1  ;;  %712 = vmax.xlane.f32.xlu1 %v711_v56  ;;  %709 = vmax.xlane.f32.xlu0 %v708_v57  ;;  %v691_v62 = vadd.f32 %v1221_v55, %v569_v58  ;;  %v544_v58 = vpop.f32.mrb[2].mxu0 }
 0x1f6   : > { %v686_v60 = vadd.f32 %v685_v59, %v568_v53  ;;  %v1210_v59 = vpop.f32.mrb[3].mxu0  ;;  %1225 = vmatprep.subr.mxu0 %v544_v58 }
 0x1f7   : > { %v720_v7 = vsel %vm704_vm2, %v691_v62, -inf  ;;  %1226 = vmatpush3.msra.mxu0 %v544_v58 }
 0x1f8   : > { %v1224_v63 = vpop.f32.mrb[8].mxu1  ;;  %v717_v2 = vsel %vm704_vm2, %v686_v60, -inf }
 0x1f9   : > { %v695_v4 = vpop.f32.mrb[9].mxu1  ;;  %715 = vmax.xlane.f32.xlu1 %v714_v1  ;;  %718 = vmax.xlane.f32.xlu0 %v717_v2  ;;  %v701_v6 = vadd.f32 %v1224_v63, %v571_v3 }
 0x1fa   : > { %v696_v5 = vadd.f32 %v695_v4, %v570_v61 }
 0x1fb   : > { %v726_v9 = vsel %vm704_vm2, %v701_v6, -inf }
 0x1fc   : > { %v723_v8 = vsel %vm704_vm2, %v696_v5, -inf }
 0x1fd   : > { %721 = vmax.xlane.f32.xlu1 %v720_v7  ;;  %724 = vmax.xlane.f32.xlu0 %v723_v8 }
 0x201   : > { %727 = vmax.xlane.f32.xlu1 %v726_v9 }
 0x27e   : > { %v707_v10 = vpop.xlane.xlu0 %706 }
 0x27f   : > { %v729_v11 = vsub.f32 %v666_v45, %v707_v10 }
 0x281   : > { %v737_v12 = vmul.f32 1.442695, %v729_v11 }
 0x282   : > { %v713_v13 = vpop.xlane.xlu1 %712  ;;  %v710_v14 = vpop.xlane.xlu0 %709 }
 0x283   : > { %1323 = vpow2.f32 %v737_v12  ;;  %v731_v17 = vsub.f32 %v676_v52, %v713_v13  ;;  %v730_v18 = vsub.f32 %v671_v47, %v710_v14 }
 0x285   : > { %v741_v19 = vmul.f32 1.442695, %v731_v17  ;;  %v739_v21 = vmul.f32 1.442695, %v730_v18 }
 0x286   : > { %v716_v22 = vpop.xlane.xlu1 %715  ;;  %v719_v23 = vpop.xlane.xlu0 %718 }
 0x287   : > { %1325 = vpow2.f32 %v741_v19  ;;  %v732_v24 = vsub.f32 %v681_v54, %v716_v22  ;;  %v733_v27 = vsub.f32 %v686_v60, %v719_v23 }
 0x288   : > { %1327 = vpow2.f32 %v739_v21 }
 0x289   : > { %v743_v28 = vmul.f32 1.442695, %v732_v24  ;;  %v745_v31 = vmul.f32 1.442695, %v733_v27  ;;  %v937_v24 = vld [vmem:[%s1856_s6] sm:$0xff]  ;;  %v938_v27 = vld [vmem:[%s1856_s6 + $0x8] sm:$0xff] }
 0x28a   : > { %v722_v32 = vpop.xlane.xlu1 %721  ;;  %v725_v34 = vpop.xlane.xlu0 %724 }
 0x28b   : > { %1329 = vpow2.f32 %v743_v28  ;;  %v734_v35 = vsub.f32 %v691_v62, %v722_v32  ;;  %v735_v36 = vsub.f32 %v696_v5, %v725_v34  ;;  %v1269_v28 = vpack.c.bf16 %v938_v27, %v937_v24  ;;  %v940_v32 = vld [vmem:[%s1856_s6 + $0x18] sm:$0xff] }
 0x28c   : > { %1331 = vpow2.f32 %v745_v31  ;;  %v939_v31 = vld [vmem:[%s1856_s6 + $0x10] sm:$0xff] }
 0x28d   : > { %v1324_v37 = vpop.eup %1323  ;;  %v747_v38 = vmul.f32 1.442695, %v734_v35  ;;  %v749_v39 = vmul.f32 1.442695, %v735_v36  ;;  %1270 = vmatpush3.bf16.msra.mxu1 %v1269_v28  ;;  %v1272_v34 = vpack.c.bf16 %v940_v32, %v939_v31 }
 0x28e   : > { %v728_v40 = vpop.xlane.xlu1 %727  ;;  %v753_v41 = vsel %vm704_vm2, %v1324_v37, 0.0  ;;  %1271 = vmatprep.subr.bf16.mxu1 %v1454_v0 }
 0x28f   : > { %1333 = vpow2.f32 %v747_v38  ;;  %v736_v42 = vsub.f32 %v701_v6, %v728_v40  ;;  %754 = vadd.xlane.f32.xlu0 %v753_v41 }
 0x290   : > { %1335 = vpow2.f32 %v749_v39 }
 0x291   : > { %v1326_v43 = vpop.eup %1325  ;;  %v751_v44 = vmul.f32 1.442695, %v736_v42  ;;  %1273 = vmatpush3.bf16.msra.mxu1 %v1272_v34 }
 0x292   : > { %v1328_v45 = vpop.eup %1327  ;;  %v759_v46 = vsel %vm704_vm2, %v1326_v43, 0.0 }
 0x293   : > { %1337 = vpow2.f32 %v751_v44  ;;  %760 = vadd.xlane.f32.xlu0 %v759_v46  ;;  %v756_v47 = vsel %vm704_vm2, %v1328_v45, 0.0 }
 0x294   : > { %757 = vadd.xlane.f32.xlu1 %v756_v47 }
 0x295   : > { %v1330_v48 = vpop.eup %1329 }
 0x296   : > { %v1332_v49 = vpop.eup %1331  ;;  %v762_v50 = vsel %vm704_vm2, %v1330_v48, 0.0 }
 0x297   : > { %v765_v51 = vsel %vm704_vm2, %v1332_v49, 0.0 }
 0x298   : > { %763 = vadd.xlane.f32.xlu1 %v762_v50  ;;  %766 = vadd.xlane.f32.xlu0 %v765_v51 }
 0x299   : > { %v1334_v52 = vpop.eup %1333 }
 0x29a   : > { %v1336_v53 = vpop.eup %1335  ;;  %v768_v54 = vsel %vm704_vm2, %v1334_v52, 0.0 }
 0x29b   : > { %v771_v55 = vsel %vm704_vm2, %v1336_v53, 0.0 }
 0x29c   : > { %769 = vadd.xlane.f32.xlu1 %v768_v54  ;;  %772 = vadd.xlane.f32.xlu0 %v771_v55 }
 0x29d   : > { %v1338_v56 = vpop.eup %1337 }
 0x29e   : > { %v774_v57 = vsel %vm704_vm2, %v1338_v56, 0.0 }
 0x2a0   : > { %775 = vadd.xlane.f32.xlu1 %v774_v57 }
 0x31c   : > { %v755_v60 = vpop.xlane.xlu0 %754 }
 0x31d   : > { %1339 = vrcp.f32 %v755_v60 }
 0x320   : > { %v761_v61 = vpop.xlane.xlu0 %760 }
 0x321   : > { %v758_v62 = vpop.xlane.xlu1 %757  ;;  %1341 = vrcp.f32 %v761_v61 }
 0x322   : > { %1343 = vrcp.f32 %v758_v62 }
 0x325   : > { %v764_v63 = vpop.xlane.xlu1 %763  ;;  %v767_v1 = vpop.xlane.xlu0 %766 }
 0x326   : > { %1345 = vrcp.f32 %v764_v63 }
 0x327   : > { %v1340_v2 = vpop.eup %1339  ;;  %1347 = vrcp.f32 %v767_v1 }
 0x328   : > { %v778_v3 = vmul.f32 %v1340_v2, %v1324_v37 }
 0x329   : > { %v770_v4 = vpop.xlane.xlu1 %769  ;;  %v773_v5 = vpop.xlane.xlu0 %772 }
 0x32a   : > { %1349 = vrcp.f32 %v770_v4  ;;  %1227 = vmatprep.mubr.msk.f32.mxu0 %vm704_vm2, %v778_v3 }
 0x32b   : > { %v1342_v6 = vpop.eup %1341  ;;  %1351 = vrcp.f32 %v773_v5 }
 0x32c   : > { %v1344_v7 = vpop.eup %1343  ;;  %v782_v8 = vmul.f32 %v1342_v6, %v1326_v43 }
 0x32d   : > { %v780_v9 = vmul.f32 %v1344_v7, %v1328_v45  ;;  %v776_v10 = vpop.xlane.xlu1 %775 }
 0x32e   : > { %1353 = vrcp.f32 %v776_v10 }
 0x32f   : > { %1228 = vmatmul.mubr.msk.f32.vlgmr.msra.gmra.mrb[4].mxu0 %vm704_vm2, %v780_v9 }
 0x330   : > { %v1346_v11 = vpop.eup %1345  ;;  %1230 = vmatprep.mubr.msk.f32.mxu0 %vm704_vm2, %v782_v8 }
 0x331   : > { %v1348_v12 = vpop.eup %1347  ;;  %v784_v13 = vmul.f32 %v1346_v11, %v1330_v48 }
 0x332   : > { %v786_v14 = vmul.f32 %v1348_v12, %v1332_v49 }
 0x333   : > { %1231 = vmatmul.mubr.msk.f32.gmra.mrb[6].mxu0 %vm704_vm2, %v784_v13 }
 0x334   : > { %v1350_v17 = vpop.eup %1349  ;;  %1233 = vmatprep.mubr.msk.f32.mxu0 %vm704_vm2, %v786_v14 }
 0x335   : > { %v1352_v18 = vpop.eup %1351  ;;  %v788_v19 = vmul.f32 %v1350_v17, %v1334_v52 }
 0x336   : > { %v790_v21 = vmul.f32 %v1352_v18, %v1336_v53 }
 0x337   : > { %1234 = vmatmul.mubr.msk.f32.gmra.mrb[8].mxu0 %vm704_vm2, %v788_v19 }
 0x338   : > { %v1354_v22 = vpop.eup %1353  ;;  %1236 = vmatprep.mubr.msk.f32.mxu0 %vm704_vm2, %v790_v21 }
 0x339   : > { %v792_v23 = vmul.f32 %v1354_v22, %v1338_v56 }
 0x33b   : > { %1237 = vmatmul.mubr.msk.f32.gmra.mrb[10].mxu0 %vm704_vm2, %v792_v23 }
 0x402   : > { %v1229_v35 = vpop.f32.mrb[4].mxu0 }
 0x403   : > { %v923_v36 = vmul.f32 %v1229_v35, %v1660_v16  ;;  %v883_v37 = vpop.f32.mrb[5].mxu0 }
 0x404   : > { %v922_v38 = vmul.f32 %v883_v37, %v1655_v15 }
 0x406   : > { %v930_v39 = vadd.f32 %v923_v36, %v922_v38  ;;  %v1232_v40 = vpop.f32.mrb[6].mxu0 }
 0x407   : > { %v893_v41 = vpop.f32.mrb[7].mxu0  ;;  %v925_v42 = vmul.f32 %v1232_v40, %v1677_v25 }
 0x408   : > { %v924_v0 = vmul.f32 %v893_v41, %v1666_v20 }
 0x40a   : > { %v931_v43 = vadd.f32 %v930_v39, %v924_v0  ;;  %v1235_v44 = vpop.f32.mrb[8].mxu0 }
 0x40b   : > { %v903_v45 = vpop.f32.mrb[9].mxu0  ;;  %v927_v16 = vmul.f32 %v1235_v44, %v1691_v29 }
 0x40c   : > { %v926_v46 = vmul.f32 %v903_v45, %v1683_v26  ;;  %v932_v47 = vadd.f32 %v931_v43, %v925_v42  ;;  %v1134_v26 = vld [vmem:[%s1857_s7] ss:$0 sm:$0xff] }
 0x40e   : > { %v933_v48 = vadd.f32 %v932_v47, %v926_v46  ;;  %v1238_v49 = vpop.f32.mrb[10].mxu0 }
 0x40f   : > { %v913_v15 = vpop.f32.mrb[11].mxu0  ;;  %v929_v20 = vmul.f32 %v1238_v49, %v1705_v33 }
 0x410   : > { %v928_v50 = vmul.f32 %v913_v15, %v1697_v30  ;;  %v934_v51 = vadd.f32 %v933_v48, %v927_v16 }
 0x412   : > { %v935_v25 = vadd.f32 %v934_v51, %v928_v50 }
 0x414   : > { %v936_v52 = vadd.f32 %v935_v25, %v929_v20 }
 0x416   : > { %1248 = vmatmul.mubr.msk.f32.vlgmr.msra.gmra.mrb[10].mxu1 %vm326_vm1, %v936_v52 }
 0x4e9   : > { %v1017_v29 = vpop.f32.mrb[10].mxu1 }
 0x4ea   : > { %v1018_v53 = vadd.f32 %v1134_v26, %v1017_v29  ;;  %v1249_v30 = vpop.f32.mrb[11].mxu1 }
 0x4ec   : > { %1021 = vst.msk [vmem:[%s320_s10] sm:$0xff] %vm326_vm1, %v1018_v53 }
 0x4ed   : > { %1398 = shalt.err (!%p1395_p4)
}
 0x4ee   : > { %s1399_s13 = scalar_lea.hbm %s1805_s26, 128  ;;  %s1403_s15 = scalar_lea.hbm %s1858_s8, 256 }
 0x4ef   : > { %p1400_p5 = scmp.ne.s32.totalorder %s1805_s26, %s1399_s13  ;;  %p1404_p0 = scmp.lt.u32.totalorder %s1805_s26, %s1858_s8 }
 0x4f0   : > { %p1405_p1 = scmp.lt.u32.totalorder %s1403_s15, %s1399_s13  ;;  %p1407_p6 = scmp.lt.u32.totalorder %s1399_s13, %s1805_s26 }
 0x4f1   : > { %p1401_p8 = pnand %p1400_p5, %p1869_p11 }
 0x4f2   : > { %p1406_p3 = por %p1405_p1, %p1404_p0 }
 0x4f3   : > { %p1402_p9 = pneg %p1401_p8 }
 0x4f4   : > { %p1408_p12 = por %p1407_p6, %p1406_p3 }
 0x4f6   : > { %p1409_p13 = pnand %p1408_p12, %p1402_p9 }
 0x4f8   : > { %1412 = shalt.err (!%p1409_p13)
}
 0x4f9   : > { %1276 = dma.vmem_to_hbm [thread:$0]  (%p1869_p11), %s1807_s20, 128, %s1805_s26, %s1023_s12  }
 0x4fa PF: > { %s1048_s24 = sand.u32 1, %s1439_s27   ;;  %p1870_p7 = scmp.ne.s32.totalorder %s1864_s18, 0 }
 0x4fb   : > { %p1871_p10 = scmp.ge.s32.totalorder %s1451_s30, 2  ;;  %s1049_s9 = scalar_lea.sflag [#allocation4], %s1048_s24 }
 0x4fd   : > { %p1283_p2 = pnand %p1871_p10, %p1870_p7 }
 0x4ff   : > { %1434 = dma.done.wait (!%p1283_p2), %s1049_s9, 128  }
 0x500   : > { %1436 = vsyncadd (!%p1283_p2), %s1049_s9, 4294967168  ;;  %p21_p4 = scmp.ge.s32.totalorder %s1528_s11, 4   ;;  %s1872_s27 = smov %s1443_s28 }
 0x501   : > { %s1873_s28 = smov %s1447_s29  ;;  %s1874_s29 = smov %s1540_s14 }
 0x502   : > { %s1875_s30 = smov %s1528_s11  ;;  %23 = sbr.rel (!%p21_p4) target bundleno = 5 (0x5), region = 97 }
 0x509   :  { %1054 = vsyncpa [#allocation3], 1 }
 0x50a   :  { %1056 = vsyncpa [#allocation3 + $0x1], 1 }
 0x50b   :  { %1057 = vsyncpa [#allocation4], 1 }
 0x50c   :  { %1059 = vsyncpa [#allocation4 + $0x1], 1 }

</bundles_post_ra>
